<compile_context>
chip_gen: v7x
topology: tpu7x:2x2x1
jax: 0.10.0
libtpu: 0.0.40
codegen_flags: <defaults>
</compile_context>

<pallas_src>
import functools

import jax
import jax.numpy as jnp
from jax import lax
from jax.experimental import pallas as pl
from jax.experimental.pallas import tpu as pltpu


# ---------------------------------------------------------------------------
# Glue: 1-D interpolation matrix matching PyTorch semantics
# ---------------------------------------------------------------------------
def _interp_matrix(in_size: int, out_size: int, mode: str) -> jnp.ndarray:
    """A of shape (out_size, in_size): y = A @ x does PyTorch's 1-D interp."""
    o = jnp.arange(out_size, dtype=jnp.float32)
    scale = in_size / out_size
    if mode == "nearest":
        # PyTorch 'nearest': src = floor(dst * in/out)
        idx = jnp.clip(jnp.floor(o * scale).astype(jnp.int32), 0, in_size - 1)
        return jax.nn.one_hot(idx, in_size, dtype=jnp.float32)
    elif mode == "bilinear":
        # PyTorch bilinear, align_corners=False: src=(dst+0.5)*in/out-0.5, clamp 0
        src = jnp.maximum((o + 0.5) * scale - 0.5, 0.0)
        i0 = jnp.clip(jnp.floor(src).astype(jnp.int32), 0, in_size - 1)
        i1 = jnp.clip(i0 + 1, 0, in_size - 1)
        w1 = src - i0.astype(jnp.float32)
        w0 = 1.0 - w1
        A = jnp.zeros((out_size, in_size), dtype=jnp.float32)
        rows = jnp.arange(out_size)
        A = A.at[rows, i0].add(w0)
        A = A.at[rows, i1].add(w1)
        return A
    else:
        raise NotImplementedError(f"mode={mode!r} not supported")


# ---------------------------------------------------------------------------
# Hardware-aware sizing helpers
# ---------------------------------------------------------------------------
def _round_up(x, m):
    return (x + m - 1) // m * m


def _padded_bytes(rows, cols, dtype):
    """VMEM footprint of a (rows, cols) tile incl. (sublane, 128) padding."""
    item = jnp.dtype(dtype).itemsize
    sublane = max(8, 32 // item)  # f32 -> 8, bf16 -> 16, int8 -> 32
    return _round_up(max(rows, 1), sublane) * _round_up(max(cols, 1), 128) * item


def _hw_params():
    """Generation-aware VMEM budget, scoped-VMEM limit and megacore flag."""
    vmem_phys = None
    try:
        info = pltpu.get_tpu_info()
        vmem_phys = getattr(info, "vmem_capacity_bytes", None)
    except Exception:
        vmem_phys = None
    if vmem_phys is None:
        vmem_phys = 64 * 1024 * 1024  # conservative default: v7x-sized VMEM
    if vmem_phys >= 100 * 1024 * 1024:  # v5e / v6e: 128 MiB VMEM, single TC
        return {"data_budget": 48 * 1024 * 1024,
                "vmem_limit": 96 * 1024 * 1024,
                "two_cores": False}
    # v7x-class: 64 MiB VMEM per TensorCore, 2 TensorCores per chip
    return {"data_budget": 22 * 1024 * 1024,
            "vmem_limit": 44 * 1024 * 1024,
            "two_cores": True}


def _choose_plane_batch(nc, h, w, h_out, w_out, x_dtype, t_dtype, a_dtype,
                        data_budget, two_cores):
    """Largest divisor of nc whose padded per-step VMEM fits the budget."""
    in_plane = _padded_bytes(h, w, x_dtype)
    out_plane = _padded_bytes(h_out, w_out, x_dtype)
    t_plane = _padded_bytes(h, w_out, t_dtype)
    # Double-buffered in/out pipeline blocks + single-buffered intermediate.
    per_plane = 2 * (in_plane + out_plane) + t_plane
    # Resident interpolation matrices (conservatively counted double-buffered).
    a_vmem = 2 * (_padded_bytes(h_out, h, a_dtype)
                  + _padded_bytes(w, w_out, a_dtype))
    avail = max(data_budget - a_vmem, per_plane)
    # 32 is a code-size cap on the fully-unrolled per-plane loop, not VMEM.
    b_cap = int(max(1, min(avail // per_plane, 32)))
    if two_cores and nc >= 2:
        # Keep >=2 grid steps so the "parallel" axis shards across both TCs.
        b_cap = min(b_cap, (nc + 1) // 2)
    for b in range(min(b_cap, nc), 0, -1):
        if nc % b == 0:
            return b
    return 1


# ---------------------------------------------------------------------------
# Pallas kernels
# ---------------------------------------------------------------------------
def _upsample_kernel_fused(ah_ref, awt_ref, x_ref, o_ref, t_ref):
    """W matmul fused over the plane batch, then per-plane H matmul."""
    ah = ah_ref[...]      # (H_out, H)   -- resident, DMA'd once
    awt = awt_ref[...]    # (W,   W_out) -- resident, DMA'd once
    b, h, w = x_ref.shape
    w_out = awt.shape[1]

    # One big MXU matmul along W for the whole batch: (B*H, W) @ (W, W_out).
    # The reshape is layout-free because H is a multiple of the sublane tile.
    x2 = x_ref[...].reshape(b * h, w)
    t = jnp.dot(x2, awt, preferred_element_type=jnp.float32)      # (B*H, W_out)
    t_ref[...] = t.reshape(b, h, w_out).astype(t_ref.dtype)

    def body(i, carry):
        y = jnp.dot(ah, t_ref[i], preferred_element_type=jnp.float32)
        o_ref[i] = y.astype(o_ref.dtype)
        return carry

    lax.fori_loop(0, b, body, 0, unroll=True)


def _upsample_kernel_per_plane(ah_ref, awt_ref, x_ref, o_ref, *, h_first):
    """Fallback: per-plane separable matmuls (used when fusion reshape
    would need a relayout)."""
    ah = ah_ref[...]      # (H_out, H)
    awt = awt_ref[...]    # (W,   W_out)
    b = x_ref.shape[0]

    def body(i, carry):
        x = x_ref[i]      # (H, W)
        if h_first:
            t = jnp.dot(ah, x, preferred_element_type=jnp.float32)      # (H_out, W)
            y = jnp.dot(t.astype(awt.dtype), awt,
                        preferred_element_type=jnp.float32)             # (H_out, W_out)
        else:
            t = jnp.dot(x, awt, preferred_element_type=jnp.float32)     # (H, W_out)
            y = jnp.dot(ah, t.astype(ah.dtype),
                        preferred_element_type=jnp.float32)             # (H_out, W_out)
        o_ref[i] = y.astype(o_ref.dtype)
        return carry

    lax.fori_loop(0, b, body, 0, unroll=True)


# ---------------------------------------------------------------------------
# Wrapper: matches torch.nn.functional.interpolate(x, scale_factor, mode)
# ---------------------------------------------------------------------------
@functools.partial(jax.jit, static_argnames=("scale_factor", "mode"))
def upsample(x: jnp.ndarray, scale_factor, mode: str) -> jnp.ndarray:
    """x: (N, C, H, W) -> (N, C, floor(H*s), floor(W*s)). PyTorch semantics."""
    N, C, H, W = x.shape
    H_out = int(H * scale_factor)
    W_out = int(W * scale_factor)
    nc = N * C

    # Weight / intermediate dtypes.  bf16 weights only for 'nearest' (exact
    # one-hot); bilinear keeps f32 weights + f32 intermediate even for bf16 x
    # (review correctness concern about compounded bf16 error).
    if mode == "nearest" and x.dtype == jnp.bfloat16:
        a_dtype = jnp.bfloat16
        t_dtype = jnp.bfloat16
    else:
        a_dtype = jnp.float32
        t_dtype = jnp.float32

    A_h = _interp_matrix(H, H_out, mode).astype(a_dtype)       # (H_out, H)
    A_w_t = _interp_matrix(W, W_out, mode).T.astype(a_dtype)   # (W, W_out)

    hw = _hw_params()
    B = _choose_plane_batch(nc, H, W, H_out, W_out, x.dtype, t_dtype, a_dtype,
                            hw["data_budget"], hw["two_cores"])
    grid_len = nc // B

    # Fuse the W matmul across the plane batch only when the (B, H, W) ->
    # (B*H, W) reshape (and the inverse split of the intermediate) is
    # layout-free, i.e. H is a multiple of the sublane tile for both dtypes.
    x_item = jnp.dtype(x.dtype).itemsize
    t_item = jnp.dtype(t_dtype).itemsize
    sub_req = max(8, 32 // min(x_item, t_item))
    fuse_w = (H % sub_req == 0)

    a_item = jnp.dtype(a_dtype).itemsize
    a_bytes = (H_out * H + W * W_out) * a_item
    if fuse_w:
        kernel = _upsample_kernel_fused
        scratch = [pltpu.VMEM((B, H, W_out), t_dtype)]
        flops = 2 * nc * (H * W * W_out + H_out * H * W_out)
    else:
        # Apply the axis with the smaller intermediate first.
        h_first = (H_out * W) <= (H * W_out)
        kernel = functools.partial(_upsample_kernel_per_plane, h_first=h_first)
        scratch = []
        if h_first:
            flops = 2 * nc * (H_out * H * W + H_out * W * W_out)
        else:
            flops = 2 * nc * (H * W * W_out + H_out * H * W_out)
    bytes_accessed = nc * (H * W + H_out * W_out) * x_item + a_bytes

    x_flat = x.reshape(nc, H, W)

    out_flat = pl.pallas_call(
        kernel,
        out_shape=jax.ShapeDtypeStruct((nc, H_out, W_out), x.dtype),
        grid_spec=pltpu.PrefetchScalarGridSpec(
            num_scalar_prefetch=0,
            grid=(grid_len,),
            in_specs=[
                # Constant index_maps -> Pallas DMAs these once; they stay
                # resident in VMEM for the whole grid.
                pl.BlockSpec((H_out, H), lambda i: (0, 0)),
                pl.BlockSpec((W, W_out), lambda i: (0, 0)),
                # B planes per grid step -> big DMAs, amortised step overhead.
                pl.BlockSpec((B, H, W), lambda i: (i, 0, 0)),
            ],
            out_specs=pl.BlockSpec((B, H_out, W_out), lambda i: (i, 0, 0)),
            scratch_shapes=scratch,
        ),
        compiler_params=pltpu.CompilerParams(
            dimension_semantics=("parallel",),
            vmem_limit_bytes=hw["vmem_limit"],
        ),
        cost_estimate=pl.CostEstimate(
            flops=int(flops),
            transcendentals=0,
            bytes_accessed=int(bytes_accessed),
        ),
    )(A_h, A_w_t, x_flat)

    return out_flat.reshape(N, C, H_out, W_out)


# ---------------------------------------------------------------------------
# Pure-JAX references (independent code paths) for correctness checks
# ---------------------------------------------------------------------------
def _ref_nearest_x2(x):
    return jnp.repeat(jnp.repeat(x, 2, axis=2), 2, axis=3)


def _ref_bilinear(x, scale_factor):
    N, C, H, W = x.shape
    H_out, W_out = int(H * scale_factor), int(W * scale_factor)

    def axis_idx(in_size, out_size):
        o = jnp.arange(out_size, dtype=jnp.float32)
        src = jnp.maximum((o + 0.5) * (in_size / out_size) - 0.5, 0.0)
        i0 = jnp.clip(jnp.floor(src).astype(jnp.int32), 0, in_size - 1)
        i1 = jnp.clip(i0 + 1, 0, in_size - 1)
        w1 = src - i0.astype(jnp.float32)
        return i0, i1, w1

    hi0, hi1, hw1 = axis_idx(H, H_out)
    wi0, wi1, ww1 = axis_idx(W, W_out)
    hw1 = hw1[:, None]
    ww1 = ww1[None, :]

    def gather_hw(img, hi, wi):
        return img[:, :, hi, :][:, :, :, wi]

    top = gather_hw(x, hi0, wi0) * (1 - ww1) + gather_hw(x, hi0, wi1) * ww1
    bot = gather_hw(x, hi1, wi0) * (1 - ww1) + gather_hw(x, hi1, wi1) * ww1
    return top * (1 - hw1) + bot * hw1


if __name__ == "__main__":
    key = jax.random.PRNGKey(0)
    x = jax.random.normal(key, (2, 4, 16, 16), dtype=jnp.float32)

    # mode='nearest', scale_factor=2 (fused W matmul path)
    y_nn = upsample(x, scale_factor=2, mode="nearest")
    jax.block_until_ready(y_nn)
    assert y_nn.shape == (2, 4, 32, 32)
    ref_nn = _ref_nearest_x2(x)
    assert jnp.max(jnp.abs(y_nn - ref_nn)) < 1e-5

    # mode='bilinear' (align_corners=False), scale_factor=2
    y_bl = upsample(x, scale_factor=2, mode="bilinear")
    jax.block_until_ready(y_bl)
    assert y_bl.shape == (2, 4, 32, 32)
    ref_bl = _ref_bilinear(x, 2)
    assert jnp.max(jnp.abs(y_bl - ref_bl)) < 1e-4

    # Non-divisible plane count (N*C=3, prime) exercises small-B fallback.
    x3 = jax.random.normal(jax.random.PRNGKey(1), (1, 3, 16, 16), jnp.float32)
    y3 = upsample(x3, scale_factor=2, mode="bilinear")
    jax.block_until_ready(y3)
    assert y3.shape == (1, 3, 32, 32)
    assert jnp.max(jnp.abs(y3 - _ref_bilinear(x3, 2))) < 1e-4

    # H not a multiple of the sublane tile -> per-plane (non-fused) fallback.
    x5 = jax.random.normal(jax.random.PRNGKey(2), (1, 2, 12, 16), jnp.float32)
    y5 = upsample(x5, scale_factor=2, mode="nearest")
    jax.block_until_ready(y5)
    assert y5.shape == (1, 2, 24, 32)
    assert jnp.max(jnp.abs(y5 - _ref_nearest_x2(x5))) < 1e-5

    # bfloat16 nearest exercises the exact bf16 one-hot weight path.
    xb = x.astype(jnp.bfloat16)
    yb = upsample(xb, scale_factor=2, mode="nearest")
    jax.block_until_ready(yb)
    assert yb.shape == (2, 4, 32, 32)
    assert jnp.max(jnp.abs(yb.astype(jnp.float32)
                           - _ref_nearest_x2(xb).astype(jnp.float32))) < 1e-6

    # bfloat16 bilinear keeps f32 weights / intermediate (review concern).
    yb2 = upsample(xb, scale_factor=2, mode="bilinear")
    jax.block_until_ready(yb2)
    assert yb2.shape == (2, 4, 32, 32)
    ref_b2 = _ref_bilinear(xb.astype(jnp.float32), 2)
    assert jnp.max(jnp.abs(yb2.astype(jnp.float32) - ref_b2)) < 3e-2

    print("KERNEL_OK")
</pallas_src>

<mosaic_0001>
module attributes {stable_mosaic.version = 11 : i64} {
  func.func @_upsample_kernel_fused(%arg0: i32, %arg1: memref<32x16xf32, #tpu.memory_space<vmem>>, %arg2: memref<16x32xf32, #tpu.memory_space<vmem>>, %arg3: memref<4x16x16xf32, #tpu.memory_space<vmem>>, %arg4: memref<4x32x32xf32, #tpu.memory_space<vmem>>, %arg5: memref<4x16x32xf32, #tpu.memory_space<vmem>>) attributes {dimension_semantics = [#tpu.dimension_semantics<parallel>], iteration_bounds = array<i64: 2>, scalar_prefetch = 0 : i64, scratch_operands = 1 : i64, tpu.core_type = #tpu.core_type<tc>, window_params = [{pipeline_mode = #tpu.pipeline_mode<synchronous>, transform_indices = @transform_0, window_bounds = array<i64: 32, 16>}, {pipeline_mode = #tpu.pipeline_mode<synchronous>, transform_indices = @transform_1, window_bounds = array<i64: 16, 32>}, {transform_indices = @transform_2, window_bounds = array<i64: 4, 16, 16>}, {transform_indices = @transform_3, window_bounds = array<i64: 4, 32, 32>}]} {
    %c0 = arith.constant 0 : index
    %c0_0 = arith.constant 0 : index
    %0 = vector.load %arg1[%c0, %c0_0] : memref<32x16xf32, #tpu.memory_space<vmem>>, vector<32x16xf32>
    %c0_1 = arith.constant 0 : index
    %c0_2 = arith.constant 0 : index
    %1 = vector.load %arg2[%c0_1, %c0_2] : memref<16x32xf32, #tpu.memory_space<vmem>>, vector<16x32xf32>
    %c0_3 = arith.constant 0 : index
    %c0_4 = arith.constant 0 : index
    %c0_5 = arith.constant 0 : index
    %2 = vector.load %arg3[%c0_3, %c0_4, %c0_5] : memref<4x16x16xf32, #tpu.memory_space<vmem>>, vector<4x16x16xf32>
    %3 = vector.shape_cast %2 : vector<4x16x16xf32> to vector<64x16xf32>
    %cst = arith.constant dense<0.000000e+00> : vector<64x32xf32>
    %4 = tpu.matmul %3, %1, %cst {dimension_numbers = #tpu.dot_dimension_numbers<[1], [0], [0], [1], [0, 0, 1, 1], [], []>} : vector<64x16xf32>, vector<16x32xf32>, vector<64x32xf32> -> vector<64x32xf32>
    %5 = vector.shape_cast %4 : vector<64x32xf32> to vector<4x16x32xf32>
    %c0_6 = arith.constant 0 : index
    %c0_7 = arith.constant 0 : index
    %c0_8 = arith.constant 0 : index
    %6 = vector.load %arg5[%c0_6, %c0_7, %c0_8] : memref<4x16x32xf32, #tpu.memory_space<vmem>>, vector<4x16x32xf32>
    tpu.vector_store %arg5[%c0_6, %c0_7, %c0_8], %5 {strides = array<i32>} : memref<4x16x32xf32, #tpu.memory_space<vmem>>, vector<4x16x32xf32>,
    %c0_i32 = arith.constant 0 : i32
    %7 = arith.index_cast %c0_i32 : i32 to index
    %c0_9 = arith.constant 0 : index
    %c0_10 = arith.constant 0 : index
    %8 = vector.load %arg5[%7, %c0_9, %c0_10] : memref<4x16x32xf32, #tpu.memory_space<vmem>>, vector<1x16x32xf32>
    %9 = vector.shape_cast %8 : vector<1x16x32xf32> to vector<16x32xf32>
    %cst_11 = arith.constant dense<0.000000e+00> : vector<32x32xf32>
    %10 = tpu.matmul %0, %9, %cst_11 {dimension_numbers = #tpu.dot_dimension_numbers<[1], [0], [0], [1], [0, 0, 1, 1], [], []>} : vector<32x16xf32>, vector<16x32xf32>, vector<32x32xf32> -> vector<32x32xf32>
    %11 = arith.index_cast %c0_i32 : i32 to index
    %c0_12 = arith.constant 0 : index
    %c0_13 = arith.constant 0 : index
    %12 = vector.load %arg4[%11, %c0_12, %c0_13] : memref<4x32x32xf32, #tpu.memory_space<vmem>>, vector<1x32x32xf32>
    %13 = vector.shape_cast %12 : vector<1x32x32xf32> to vector<32x32xf32>
    %14 = vector.shape_cast %10 : vector<32x32xf32> to vector<1x32x32xf32>
    tpu.vector_store %arg4[%11, %c0_12, %c0_13], %14 {strides = array<i32>} : memref<4x32x32xf32, #tpu.memory_space<vmem>>, vector<1x32x32xf32>,
    %c1_i32 = arith.constant 1 : i32
    %15 = arith.index_cast %c1_i32 : i32 to index
    %c0_14 = arith.constant 0 : index
    %c0_15 = arith.constant 0 : index
    %16 = vector.load %arg5[%15, %c0_14, %c0_15] : memref<4x16x32xf32, #tpu.memory_space<vmem>>, vector<1x16x32xf32>
    %17 = vector.shape_cast %16 : vector<1x16x32xf32> to vector<16x32xf32>
    %cst_16 = arith.constant dense<0.000000e+00> : vector<32x32xf32>
    %18 = tpu.matmul %0, %17, %cst_16 {dimension_numbers = #tpu.dot_dimension_numbers<[1], [0], [0], [1], [0, 0, 1, 1], [], []>} : vector<32x16xf32>, vector<16x32xf32>, vector<32x32xf32> -> vector<32x32xf32>
    %19 = arith.index_cast %c1_i32 : i32 to index
    %c0_17 = arith.constant 0 : index
    %c0_18 = arith.constant 0 : index
    %20 = vector.load %arg4[%19, %c0_17, %c0_18] : memref<4x32x32xf32, #tpu.memory_space<vmem>>, vector<1x32x32xf32>
    %21 = vector.shape_cast %20 : vector<1x32x32xf32> to vector<32x32xf32>
    %22 = vector.shape_cast %18 : vector<32x32xf32> to vector<1x32x32xf32>
    tpu.vector_store %arg4[%19, %c0_17, %c0_18], %22 {strides = array<i32>} : memref<4x32x32xf32, #tpu.memory_space<vmem>>, vector<1x32x32xf32>,
    %c2_i32 = arith.constant 2 : i32
    %23 = arith.index_cast %c2_i32 : i32 to index
    %c0_19 = arith.constant 0 : index
    %c0_20 = arith.constant 0 : index
    %24 = vector.load %arg5[%23, %c0_19, %c0_20] : memref<4x16x32xf32, #tpu.memory_space<vmem>>, vector<1x16x32xf32>
    %25 = vector.shape_cast %24 : vector<1x16x32xf32> to vector<16x32xf32>
    %cst_21 = arith.constant dense<0.000000e+00> : vector<32x32xf32>
    %26 = tpu.matmul %0, %25, %cst_21 {dimension_numbers = #tpu.dot_dimension_numbers<[1], [0], [0], [1], [0, 0, 1, 1], [], []>} : vector<32x16xf32>, vector<16x32xf32>, vector<32x32xf32> -> vector<32x32xf32>
    %27 = arith.index_cast %c2_i32 : i32 to index
    %c0_22 = arith.constant 0 : index
    %c0_23 = arith.constant 0 : index
    %28 = vector.load %arg4[%27, %c0_22, %c0_23] : memref<4x32x32xf32, #tpu.memory_space<vmem>>, vector<1x32x32xf32>
    %29 = vector.shape_cast %28 : vector<1x32x32xf32> to vector<32x32xf32>
    %30 = vector.shape_cast %26 : vector<32x32xf32> to vector<1x32x32xf32>
    tpu.vector_store %arg4[%27, %c0_22, %c0_23], %30 {strides = array<i32>} : memref<4x32x32xf32, #tpu.memory_space<vmem>>, vector<1x32x32xf32>,
    %c3_i32 = arith.constant 3 : i32
    %31 = arith.index_cast %c3_i32 : i32 to index
    %c0_24 = arith.constant 0 : index
    %c0_25 = arith.constant 0 : index
    %32 = vector.load %arg5[%31, %c0_24, %c0_25] : memref<4x16x32xf32, #tpu.memory_space<vmem>>, vector<1x16x32xf32>
    %33 = vector.shape_cast %32 : vector<1x16x32xf32> to vector<16x32xf32>
    %cst_26 = arith.constant dense<0.000000e+00> : vector<32x32xf32>
    %34 = tpu.matmul %0, %33, %cst_26 {dimension_numbers = #tpu.dot_dimension_numbers<[1], [0], [0], [1], [0, 0, 1, 1], [], []>} : vector<32x16xf32>, vector<16x32xf32>, vector<32x32xf32> -> vector<32x32xf32>
    %35 = arith.index_cast %c3_i32 : i32 to index
    %c0_27 = arith.constant 0 : index
    %c0_28 = arith.constant 0 : index
    %36 = vector.load %arg4[%35, %c0_27, %c0_28] : memref<4x32x32xf32, #tpu.memory_space<vmem>>, vector<1x32x32xf32>
    %37 = vector.shape_cast %36 : vector<1x32x32xf32> to vector<32x32xf32>
    %38 = vector.shape_cast %34 : vector<32x32xf32> to vector<1x32x32xf32>
    tpu.vector_store %arg4[%35, %c0_27, %c0_28], %38 {strides = array<i32>} : memref<4x32x32xf32, #tpu.memory_space<vmem>>, vector<1x32x32xf32>,
    %c4_i32 = arith.constant 4 : i32
    return
  }
  func.func @transform_0(%arg0: i32) -> (i32, i32) {
    %c0_i32 = arith.constant 0 : i32
    %c0_i32_0 = arith.constant 0 : i32
    %c0_i32_1 = arith.constant 0 : i32
    return %c0_i32, %c0_i32_0 : i32, i32
  }
  func.func @transform_1(%arg0: i32) -> (i32, i32) {
    %c0_i32 = arith.constant 0 : i32
    %c0_i32_0 = arith.constant 0 : i32
    %c0_i32_1 = arith.constant 0 : i32
    return %c0_i32, %c0_i32_0 : i32, i32
  }
  func.func @transform_2(%arg0: i32) -> (i32, i32, i32) {
    %c0_i32 = arith.constant 0 : i32
    %c0_i32_0 = arith.constant 0 : i32
    %c0_i32_1 = arith.constant 0 : i32
    return %arg0, %c0_i32, %c0_i32_0 : i32, i32, i32
  }
  func.func @transform_3(%arg0: i32) -> (i32, i32, i32) {
    %c0_i32 = arith.constant 0 : i32
    %c0_i32_0 = arith.constant 0 : i32
    %c0_i32_1 = arith.constant 0 : i32
    return %arg0, %c0_i32, %c0_i32_0 : i32, i32, i32
  }
}

</mosaic_0001>

<bundles_post_ra>
// kernel: upsample.1
= control target key start
LH: loop header
LB: loop body
LE: loop exit
PB: predicated region body
PF: predicated region fallthrough
CT: control target
= control target key end

     0   :  { %8 = vsyncpa [#allocation4], 0  ;;  %s1403_s0 = inlined_call_operand.vmem [shape: f32[32,16], index: 0, kind: input, shape index: {}]   ;;  %s1404_s1 = inlined_call_operand.vmem [shape: f32[16,32], index: 1, kind: input, shape index: {}]   ;;  %s1405_s2 = inlined_call_operand.hbm [shape: f32[8,16,16], index: 2, kind: input, shape index: {}]   ;;  %s1406_s3 = inlined_call_operand.hbm [shape: f32[8,32,32], index: 3, kind: output, shape index: {}]  }
   0x1   :  { %10 = vsyncpa [#allocation4 + $0x1], 0 }
   0x2   :  { %11 = vsyncpa [#allocation5], 0 }
   0x3   :  { %13 = vsyncpa [#allocation5 + $0x1], 0  ;;  %s1155_s12 = smov 0   ;;  %s1157_s13 = smov 0  }
   0x4   :  { %s1159_s14 = smov 0   ;;  %s1161_s15 = smov 0  }
   0x5 LB: > { %s1176_s16 = sadd.s32 4294967295, %s1127_s15   ;;  %s815_s17 = sadd.s32 4294967294, %s1127_s15   ;;  %s1127_s15 = sphi %s1161_s15, %s1419_s15   ;;  %s1123_s14 = sphi %s1159_s14, %s1418_s14   ;;  %s1119_s13 = sphi %s1157_s13, %s1417_s13   ;;  %s1115_s12 = sphi %s1155_s12, %s1416_s12  }
   0x6   : > { %s1180_s18 = sadd.s32 1, %s1127_s15   ;;  %s68_s19 = sadd.s32 1, %s1123_s14 }
   0x7   : > { %s65_s20 = ssub.s32 %s1127_s15, %s1180_s18  ;;  %p75_p0 = scmp.ne.s32.totalorder %s1123_s14, %s1119_s13 }
   0x8   : > { %p66_p1 = scmp.eq.s32.totalorder %s65_s20, 0  ;;  %p76_p2 = scmp.eq.s32.totalorder %s1127_s15, 0 }
   0x9   : > { %p81_p3 = scmp.ne.s32.totalorder %s1119_s13, %s1115_s12  ;;  %p82_p4 = scmp.eq.s32.totalorder %s1176_s16, 0 }
   0xa   : > { %s1192_s21 = scalar_select %p66_p1, %s1123_s14, %s68_s19  }
   0xb   : > { %p1194_p5 = por %p76_p2, %p75_p0  ;;  %p1198_p6 = por %p82_p4, %p81_p3 }
   0xc   : > { %p105_p7 = scmp.eq.s32.totalorder %s1176_s16, 1  ;;  %p111_p8 = scmp.eq.s32.totalorder %s815_s17, 1 }
   0xd   : > { %p993_p10 = scmp.lt.s32.totalorder %s1127_s15, 2  ;;  %s137_s26 = sand.u32 1, %s1123_s14  }
   0xe   : > { %p1205_p11 = por %p105_p7, %p75_p0  ;;  %p1209_p12 = por %p111_p8, %p81_p3 }
   0xf   : > { %s868_s27 = sshll.u32 %s1127_s15, 10  ;;  %s818_s28 = sshll.u32 %s137_s26, 6 }
  0x10   : > { %s1410_s24 = scalar_select %p1205_p11, 1, 0 }
  0x11   : > { %s1411_s25 = scalar_select %p1209_p12, 1, 0 }
  0x12   : > { %s1218_s4 = scalar_lea.hbm %s1405_s2, %s868_s27  ;;  %s141_s5 = scalar_lea.vmem [#allocation3], %s818_s28 }
  0x13   : > { %s149_s6 = sshll.u32 %s141_s5, 4  ;;  %p1222_p13 = pnand %p993_p10, %p1194_p5  ;;  %s1226_s6 = int_to_ptr.vmem [resolvable:$true] %s149_s6 }
  0x14   : > { %s1228_s8 = scalar_lea.sflag [#allocation4], %s137_s26  ;;  %s1031_s9 = scalar_lea.hbm %s1218_s4, 1024 }
  0x15   : > { %p1032_p0 = scmp.ne.s32.totalorder %s1218_s4, %s1031_s9  ;;  %p1033_p1 = pneg %p1222_p13 }
  0x16   : > { %s1036_s17 = scalar_lea.hbm %s1405_s2, 2048  ;;  %p1037_p4 = scmp.lt.u32.totalorder %s1218_s4, %s1405_s2 }
  0x17   : > { %p1034_p2 = pnand %p1033_p1, %p1032_p0  ;;  %p1038_p5 = scmp.lt.u32.totalorder %s1036_s17, %s1031_s9 }
  0x18   : > { %p1040_p8 = scmp.lt.u32.totalorder %s1031_s9, %s1218_s4 }
  0x19   : > { %p1035_p3 = pneg %p1034_p2  ;;  %p1039_p7 = por %p1038_p5, %p1037_p4 }
  0x1b   : > { %p1041_p10 = por %p1040_p8, %p1039_p7 }
  0x1d   : > { %p1042_p9 = pnand %p1041_p10, %p1035_p3 }
  0x1f   : > { %1045 = shalt.err (!%p1042_p9)
}
  0x20   : > { %s1046_s22 = scalar_lea.vmem %s1226_s6, 1024  ;;  %s1129_s26 = smov [#allocation3]  }
  0x21   : > { %p1047_p0 = scmp.ne.s32.totalorder %s1226_s6, %s1046_s22  ;;  %s1051_s27 = sshll.u32 %s1129_s26, 4  ;;  %s1052_s27 = int_to_ptr.vmem [resolvable:$false] %s1051_s27 }
  0x22   : > { %s1053_s28 = scalar_lea.vmem %s1052_s27, 2048  ;;  %p1054_p11 = scmp.lt.s32.totalorder %s1226_s6, %s1052_s27 }
  0x23   : > { %p1049_p2 = pnand %p1047_p0, %p1033_p1  ;;  %p1055_p4 = scmp.lt.s32.totalorder %s1053_s28, %s1046_s22 }
  0x25   : > { %p1050_p12 = pneg %p1049_p2  ;;  %p1056_p5 = por %p1055_p4, %p1054_p11 }
  0x27   : > { %p1057_p7 = pnand %p1056_p5, %p1050_p12 }
  0x29   : > { %1060 = shalt.err (!%p1057_p7)
}
  0x2a   : > { %s1130_s29 = smov 128   ;;  %s1131_s30 = smov 8  }
  0x2b   : > { %988 = dma.hbm_to_vmem [thread:$0]  (!%p1222_p13), %s1218_s4, 1024, %s1226_s6, %s1228_s8, %s1130_s29, %s1130_s29, %s1131_s30  }
  0x2c   : > { %p822_p9 = scmp.ge.s32.totalorder %s1127_s15, 1  ;;  %p157_p1 = scmp.lt.s32.totalorder %s1127_s15, 3 }
  0x2e   : > { %p158_p3 = pnand %p822_p9, %p157_p1 }
  0x2f   : > { %s1259_s5 = sand.u32 (!%p158_p3), 1, %s1119_s13  }
  0x30   : > { %161 = sbr.rel (%p158_p3) target bundleno = 538 (0x21a), region = 32  ;;  %s823_s9 = sshll.u32 (!%p158_p3), %s1259_s5, 6 }
  0x31   : > { %s164_s10 = scalar_lea.sflag (!%p158_p3), [#allocation4], %s1259_s5  ;;  %s167_s11 = scalar_lea.vmem (!%p158_p3), [#allocation3], %s823_s9 }
  0x37   : > { %1106 = dma.done.wait (%p1198_p6), %s164_s10, 1024  }
  0x38   : > { %1108 = vsyncadd (%p1198_p6), %s164_s10, 4294966272  ;;  %vm206_vm0 = vcmask 130048   ;;  %v196_v0 = vld [vmem:[%s1404_s1] sm:$0xff]  ;;  %v197_v1 = vld [vmem:[%s1404_s1 + $0x8] sm:$0xff]  ;;  %vm336_vm1 = vcmask 261120   ;;  %s824_s29 = sshll.u32 %s1259_s5, 7 }
  0x39   : > { %v198_v2 = vld [vmem:[%s167_s11] sm:$0xff]  ;;  %v961_v3 = vpack.c.bf16 %v197_v1, %v196_v0  ;;  %v199_v4 = vld [vmem:[%s167_s11 + $0x8] sm:$0xff]  ;;  %v200_v5 = vld [vmem:[%s167_s11 + $0x10] sm:$0xff]  ;;  %s1318_s30 = scalar_lea.vmem [#allocation6], %s824_s29  ;;  %s870_s9 = sshll.u32 %s1176_s16, 11 }
  0x3a   : > { %909 = vmatprep.mubr.msk.f32.mxu0 %vm206_vm0, %v198_v2  ;;  %v201_v6 = vld [vmem:[%s167_s11 + $0x18] sm:$0xff]  ;;  %v202_v7 = vld [vmem:[%s167_s11 + $0x20] sm:$0xff]  ;;  %v203_v8 = vld [vmem:[%s167_s11 + $0x28] sm:$0xff]  ;;  %s742_s10 = sshll.u32 %s1318_s30, 4  ;;  %s1353_s6 = scalar_lea.hbm %s1406_s3, %s870_s9  ;;  %s1355_s10 = int_to_ptr.vmem [resolvable:$true] %s742_s10 }
  0x3b   : > { %962 = vmatprep.subr.bf16.mxu0 %v961_v3  ;;  %v204_v9 = vld [vmem:[%s167_s11 + $0x30] sm:$0xff]  ;;  %v205_v10 = vld [vmem:[%s167_s11 + $0x38] sm:$0xff]  ;;  %v192_v11 = vld [vmem:[%s1403_s0] sm:$0xff]  ;;  %s728_s16 = scalar_lea.sflag [#allocation5], %s1259_s5  ;;  %s1061_s7 = scalar_lea.vmem %s1355_s10, 2048 }
  0x3c   : > { %964 = vmatpush3.bf16.msra.mxu0 %v961_v3  ;;  %925 = vmatprep.mubr.msk.f32.mxu1 %vm206_vm0, %v192_v11  ;;  %v193_v25 = vld [vmem:[%s1403_s0 + $0x8] sm:$0xff]  ;;  %v194_v27 = vld [vmem:[%s1403_s0 + $0x10] sm:$0xff]  ;;  %v195_v30 = vld [vmem:[%s1403_s0 + $0x18] sm:$0xff]  ;;  %p1062_p6 = scmp.ne.s32.totalorder %s1355_s10, %s1061_s7  ;;  %p1413_p11 = scmp.ne.s32.totalorder %s1410_s24, 0 }
  0x3d   : > { %s1132_s8 = smov [#allocation6]  }
  0x3e   : > { %p1063_p12 = pnand %p1062_p6, %p1413_p11  ;;  %s1065_s23 = sshll.u32 %s1132_s8, 4  ;;  %s1066_s23 = int_to_ptr.vmem [resolvable:$false] %s1065_s23 }
  0x3f   : > { %910 = vmatmul.mubr.msk.f32.vlgmr.msra.gmra.mrb[0].mxu0 %vm206_vm0, %v199_v4  ;;  %s1067_s17 = scalar_lea.vmem %s1066_s23, 4096  ;;  %p1068_p8 = scmp.lt.s32.totalorder %s1355_s10, %s1066_s23 }
  0x40   : > { %912 = vmatprep.mubr.msk.f32.mxu0 %vm206_vm0, %v200_v5  ;;  %p1064_p13 = pneg %p1063_p12  ;;  %p1069_p10 = scmp.lt.s32.totalorder %s1067_s17, %s1061_s7 }
  0x42   : > { %p1070_p0 = por %p1069_p10, %p1068_p8 }
  0x43   : > { %913 = vmatmul.mubr.msk.f32.gmra.mrb[2].mxu0 %vm206_vm0, %v201_v6 }
  0x44   : > { %915 = vmatprep.mubr.msk.f32.mxu0 %vm206_vm0, %v202_v7  ;;  %p1071_p2 = pnand %p1070_p0, %p1064_p13 }
  0x47   : > { %916 = vmatmul.mubr.msk.f32.gmra.mrb[4].mxu0 %vm206_vm0, %v203_v8 }
  0x48   : > { %918 = vmatprep.mubr.msk.f32.mxu0 %vm206_vm0, %v204_v9 }
  0x4b   : > { %919 = vmatmul.mubr.msk.f32.gmra.mrb[6].mxu0 %vm206_vm0, %v205_v10 }
  0x4c   : > { %945 = vmatprep.mubr.msk.f32.mxu0 %vm206_vm0, %v192_v11 }
 0x112   : > { %v911_v12 = vpop.f32.mrb[0].mxu0 }
 0x113   : > { %338 = vst.msk [vmem:[#allocation2 + $0x8] sm:$0xff] %vm336_vm1, %v911_v12  ;;  %v297_v13 = vpop.f32.mrb[1].mxu0 }
 0x114   : > { %337 = vst.msk [vmem:[#allocation2] sm:$0xff] %vm336_vm1, %v297_v13 }
 0x116   : > { %v914_v14 = vpop.f32.mrb[2].mxu0 }
 0x117   : > { %340 = vst.msk [vmem:[#allocation2 + $0x18] sm:$0xff] %vm336_vm1, %v914_v14  ;;  %v307_v15 = vpop.f32.mrb[3].mxu0 }
 0x118   : > { %339 = vst.msk [vmem:[#allocation2 + $0x10] sm:$0xff] %vm336_vm1, %v307_v15 }
 0x11a   : > { %v917_v16 = vpop.f32.mrb[4].mxu0  ;;  %v346_v17 = vld [vmem:[#allocation2 + $0x8] sm:$0xff] }
 0x11b   : > { %342 = vst.msk [vmem:[#allocation2 + $0x28] sm:$0xff] %vm336_vm1, %v917_v16  ;;  %v317_v18 = vpop.f32.mrb[5].mxu0  ;;  %v345_v19 = vld [vmem:[#allocation2] sm:$0xff] }
 0x11c   : > { %341 = vst.msk [vmem:[#allocation2 + $0x20] sm:$0xff] %vm336_vm1, %v317_v18  ;;  %v965_v20 = vpack.c.bf16 %v346_v17, %v345_v19 }
 0x11e   : > { %966 = vmatprep.subr.bf16.mxu1 %v965_v20  ;;  %v920_v21 = vpop.f32.mrb[6].mxu0  ;;  %v450_v22 = vld [vmem:[#allocation2 + $0x18] sm:$0xff] }
 0x11f   : > { %968 = vmatpush3.bf16.msra.mxu1 %v965_v20  ;;  %344 = vst.msk [vmem:[#allocation2 + $0x38] sm:$0xff] %vm336_vm1, %v920_v21  ;;  %v327_v23 = vpop.f32.mrb[7].mxu0  ;;  %v449_v24 = vld [vmem:[#allocation2 + $0x10] sm:$0xff] }
 0x120   : > { %343 = vst.msk [vmem:[#allocation2 + $0x30] sm:$0xff] %vm336_vm1, %v327_v23  ;;  %v969_v26 = vpack.c.bf16 %v450_v22, %v449_v24 }
 0x122   : > { %970 = vmatprep.subr.bf16.mxu1 %v969_v26  ;;  %926 = vmatmul.mubr.msk.f32.vlgmr.msra.gmra.mrb[0].mxu1 %vm206_vm0, %v193_v25  ;;  %v543_v28 = vld [vmem:[#allocation2 + $0x28] sm:$0xff] }
 0x123   : > { %972 = vmatpush3.bf16.msra.mxu1 %v969_v26  ;;  %v542_v29 = vld [vmem:[#allocation2 + $0x20] sm:$0xff]  ;;  %928 = vmatprep.mubr.msk.f32.mxu1 %vm206_vm0, %v194_v27 }
 0x124   : > { %v973_v31 = vpack.c.bf16 %v543_v28, %v542_v29 }
 0x126   : > { %974 = vmatprep.subr.bf16.mxu0 %v973_v31  ;;  %929 = vmatmul.mubr.msk.f32.gmra.mrb[2].mxu1 %vm206_vm0, %v195_v30  ;;  %v636_v32 = vld [vmem:[#allocation2 + $0x38] sm:$0xff] }
 0x127   : > { %976 = vmatpush3.bf16.msra.mxu0 %v973_v31  ;;  %935 = vmatprep.mubr.msk.f32.mxu1 %vm206_vm0, %v192_v11  ;;  %v635_v33 = vld [vmem:[#allocation2 + $0x30] sm:$0xff] }
 0x128   : > { %v977_v34 = vpack.c.bf16 %v636_v32, %v635_v33 }
 0x12a   : > { %978 = vmatprep.subr.bf16.mxu1 %v977_v34  ;;  %936 = vmatmul.mubr.msk.f32.vlgmr.msra.gmra.mrb[4].mxu1 %vm206_vm0, %v193_v25 }
 0x12b   : > { %980 = vmatpush3.bf16.msra.mxu1 %v977_v34  ;;  %938 = vmatprep.mubr.msk.f32.mxu1 %vm206_vm0, %v194_v27 }
 0x12c   : > { %946 = vmatmul.mubr.msk.f32.vlgmr.msra.gmra.mrb[8].mxu0 %vm206_vm0, %v193_v25 }
 0x12d   : > { %948 = vmatprep.mubr.msk.f32.mxu0 %vm206_vm0, %v194_v27 }
 0x12e   : > { %939 = vmatmul.mubr.msk.f32.gmra.mrb[6].mxu1 %vm206_vm0, %v195_v30 }
 0x12f   : > { %955 = vmatprep.mubr.msk.f32.mxu1 %vm206_vm0, %v192_v11 }
 0x130   : > { %949 = vmatmul.mubr.msk.f32.gmra.mrb[10].mxu0 %vm206_vm0, %v195_v30 }
 0x132   : > { %956 = vmatmul.mubr.msk.f32.vlgmr.msra.gmra.mrb[8].mxu1 %vm206_vm0, %v193_v25 }
 0x133   : > { %958 = vmatprep.mubr.msk.f32.mxu1 %vm206_vm0, %v194_v27 }
 0x136   : > { %959 = vmatmul.mubr.msk.f32.gmra.mrb[10].mxu1 %vm206_vm0, %v195_v30 }
 0x1f5   : > { %v927_v35 = vpop.f32.mrb[0].mxu1 }
 0x1f6   : > { %445 = vst.msk [vmem:[%s1318_s30 + $0x8] sm:$0xff] %vm336_vm1, %v927_v35  ;;  %v425_v36 = vpop.f32.mrb[1].mxu1 }
 0x1f7   : > { %444 = vst.msk [vmem:[%s1318_s30] sm:$0xff] %vm336_vm1, %v425_v36 }
 0x1f9   : > { %v930_v37 = vpop.f32.mrb[2].mxu1 }
 0x1fa   : > { %447 = vst.msk [vmem:[%s1318_s30 + $0x18] sm:$0xff] %vm336_vm1, %v930_v37  ;;  %v435_v38 = vpop.f32.mrb[3].mxu1 }
 0x1fb   : > { %446 = vst.msk [vmem:[%s1318_s30 + $0x10] sm:$0xff] %vm336_vm1, %v435_v38 }
 0x1fd   : > { %v937_v39 = vpop.f32.mrb[4].mxu1 }
 0x1fe   : > { %842 = vst.msk [vmem:[%s1318_s30 + $0x28] sm:$0xff] %vm336_vm1, %v937_v39  ;;  %v517_v40 = vpop.f32.mrb[5].mxu1 }
 0x1ff   : > { %841 = vst.msk [vmem:[%s1318_s30 + $0x20] sm:$0xff] %vm336_vm1, %v517_v40  ;;  %v947_v41 = vpop.f32.mrb[8].mxu0 }
 0x200   : > { %850 = vst.msk [vmem:[%s1318_s30 + $0x48] sm:$0xff] %vm336_vm1, %v947_v41  ;;  %v610_v42 = vpop.f32.mrb[9].mxu0 }
 0x201   : > { %v940_v43 = vpop.f32.mrb[6].mxu1  ;;  %849 = vst.msk [vmem:[%s1318_s30 + $0x40] sm:$0xff] %vm336_vm1, %v610_v42 }
 0x202   : > { %844 = vst.msk [vmem:[%s1318_s30 + $0x38] sm:$0xff] %vm336_vm1, %v940_v43  ;;  %v527_v44 = vpop.f32.mrb[7].mxu1 }
 0x203   : > { %843 = vst.msk [vmem:[%s1318_s30 + $0x30] sm:$0xff] %vm336_vm1, %v527_v44  ;;  %v950_v45 = vpop.f32.mrb[10].mxu0 }
 0x204   : > { %852 = vst.msk [vmem:[%s1318_s30 + $0x58] sm:$0xff] %vm336_vm1, %v950_v45  ;;  %v620_v46 = vpop.f32.mrb[11].mxu0 }
 0x205   : > { %v957_v47 = vpop.f32.mrb[8].mxu1  ;;  %851 = vst.msk [vmem:[%s1318_s30 + $0x50] sm:$0xff] %vm336_vm1, %v620_v46 }
 0x206   : > { %858 = vst.msk [vmem:[%s1318_s30 + $0x68] sm:$0xff] %vm336_vm1, %v957_v47  ;;  %v703_v48 = vpop.f32.mrb[9].mxu1 }
 0x207   : > { %857 = vst.msk [vmem:[%s1318_s30 + $0x60] sm:$0xff] %vm336_vm1, %v703_v48 }
 0x209   : > { %v960_v49 = vpop.f32.mrb[10].mxu1 }
 0x20a   : > { %860 = vst.msk [vmem:[%s1318_s30 + $0x78] sm:$0xff] %vm336_vm1, %v960_v49  ;;  %v713_v50 = vpop.f32.mrb[11].mxu1 }
 0x20b   : > { %859 = vst.msk [vmem:[%s1318_s30 + $0x70] sm:$0xff] %vm336_vm1, %v713_v50 }
 0x20c   : > { %1074 = shalt.err (!%p1071_p2)
}
 0x20d   : > { %s1075_s19 = scalar_lea.hbm %s1353_s6, 2048  ;;  %s1079_s26 = scalar_lea.hbm %s1406_s3, 4096 }
 0x20e   : > { %p1076_p4 = scmp.ne.s32.totalorder %s1353_s6, %s1075_s19  ;;  %p1080_p9 = scmp.lt.u32.totalorder %s1353_s6, %s1406_s3 }
 0x20f   : > { %p1081_p1 = scmp.lt.u32.totalorder %s1079_s26, %s1075_s19  ;;  %p1083_p6 = scmp.lt.u32.totalorder %s1075_s19, %s1353_s6 }
 0x210   : > { %p1077_p5 = pnand %p1076_p4, %p1413_p11 }
 0x211   : > { %p1082_p3 = por %p1081_p1, %p1080_p9 }
 0x212   : > { %p1078_p7 = pneg %p1077_p5 }
 0x213   : > { %p1084_p12 = por %p1083_p6, %p1082_p3 }
 0x215   : > { %p1085_p13 = pnand %p1084_p12, %p1078_p7 }
 0x217   : > { %1088 = shalt.err (!%p1085_p13)
}
 0x218   : > { %s1133_s29 = smov 128   ;;  %s1134_s30 = smov 8  }
 0x219   : > { %983 = dma.vmem_to_hbm [thread:$0]  (%p1413_p11), %s1355_s10, 2048, %s1353_s6, %s728_s16, %s1133_s29, %s1133_s29, %s1134_s30  }
 0x21a PF: > { %s757_s9 = sand.u32 1, %s1115_s12   ;;  %p1414_p8 = scmp.ne.s32.totalorder %s1411_s25, 0 }
 0x21b   : > { %p1415_p10 = scmp.ge.s32.totalorder %s1127_s15, 2  ;;  %s758_s11 = scalar_lea.sflag [#allocation5], %s757_s9 }
 0x21d   : > { %p990_p0 = pnand %p1415_p10, %p1414_p8 }
 0x21f   : > { %1110 = dma.done.wait (!%p990_p0), %s758_s11, 2048  }
 0x220   : > { %1112 = vsyncadd (!%p990_p0), %s758_s11, 4294965248  ;;  %p16_p2 = scmp.ge.s32.totalorder %s1180_s18, 4   ;;  %s1416_s12 = smov %s1119_s13 }
 0x221   : > { %s1417_s13 = smov %s1123_s14  ;;  %s1418_s14 = smov %s1192_s21 }
 0x222   : > { %s1419_s15 = smov %s1180_s18  ;;  %18 = sbr.rel (!%p16_p2) target bundleno = 5 (0x5), region = 83 }
 0x229   :  { %763 = vsyncpa [#allocation4], 1 }
 0x22a   :  { %765 = vsyncpa [#allocation4 + $0x1], 1 }
 0x22b   :  { %766 = vsyncpa [#allocation5], 1 }
 0x22c   :  { %768 = vsyncpa [#allocation5 + $0x1], 1 }

</bundles_post_ra>
